<compile_context>
chip_gen: v6e
topology: v6e:2x2x1
jax: 0.10.0
libtpu: 0.0.40
codegen_flags: <defaults>
</compile_context>

<pallas_src>
import functools

import jax
import jax.numpy as jnp
from jax.experimental import pallas as pl
from jax.experimental.pallas import tpu as pltpu


# ----------------------------- small helpers ------------------------------ #

def _round_up(x: int, m: int) -> int:
    return (x + m - 1) // m * m


def _cdiv(a: int, b: int) -> int:
    return (a + b - 1) // b


def _pick_tile(dim: int, preferred: int, align: int) -> int:
    # Smallest align-multiple covering `dim`, capped at `preferred`.
    return min(preferred, _round_up(dim, align))


def _halve_aligned(t: int, align: int) -> int:
    return max(align, _round_up(t // 2, align))


def _sublane_align(dtype) -> int:
    # f32 -> 8, bf16/f16 -> 16, int8/fp8 -> 32 (sublane packing tiles).
    itemsize = jnp.dtype(dtype).itemsize
    return max(8, 32 // max(1, itemsize))


# -------------------------------- kernels --------------------------------- #

def _dot_kernel_single_k(dec_ref, enc_ref, out_ref, *, compute_dtype):
    # dec_ref: (tm, tk), enc_ref: (tn, tk), out_ref: (tm, tn)  (batch squeezed)
    # Whole contraction in one MXU dot_general; no accumulator needed.
    dec = dec_ref[...].astype(compute_dtype)
    enc = enc_ref[...].astype(compute_dtype)
    out_ref[...] = jax.lax.dot_general(
        dec,
        enc,
        dimension_numbers=(((1,), (1,)), ((), ())),
        preferred_element_type=jnp.float32,
    ).astype(out_ref.dtype)


def _dot_kernel_multi_k(dec_ref, enc_ref, out_ref, acc_ref, *, compute_dtype):
    # Same tiles, but H is split across the innermost ("arbitrary") grid axis
    # and accumulated in an f32 VMEM scratch.
    k = pl.program_id(3)

    @pl.when(k == 0)
    def _init():
        acc_ref[...] = jnp.zeros_like(acc_ref)

    dec = dec_ref[...].astype(compute_dtype)
    enc = enc_ref[...].astype(compute_dtype)
    acc_ref[...] += jax.lax.dot_general(
        dec,
        enc,
        dimension_numbers=(((1,), (1,)), ((), ())),
        preferred_element_type=jnp.float32,
    )

    @pl.when(k == pl.num_programs(3) - 1)
    def _finalize():
        out_ref[...] = acc_ref[...].astype(out_ref.dtype)


# -------------------------------- wrapper ---------------------------------- #

def dot_attention(
    decoder_states: jax.Array,
    encoder_states: jax.Array,
    *,
    use_bf16_compute: bool = False,
    prefer_xla_for_small: bool = True,
) -> jax.Array:
    """attn = bmm(decoder_states, encoder_states.transpose(1, 2)) via Pallas."""
    B, T_dec, H = decoder_states.shape
    B2, T_enc, H2 = encoder_states.shape
    assert B == B2 and H == H2, "batch / hidden dims must match"

    out_dtype = jnp.result_type(decoder_states.dtype, encoder_states.dtype)

    # Sub-vreg problems: padding + launch overhead dominate -> plain XLA bmm.
    if prefer_xla_for_small and (B * T_dec * T_enc * H) < (1 << 18):
        return jnp.einsum(
            "btd,bkd->btk", decoder_states, encoder_states
        ).astype(out_dtype)

    dec_itemsize = jnp.dtype(decoder_states.dtype).itemsize
    enc_itemsize = jnp.dtype(encoder_states.dtype).itemsize
    in_itemsize = max(dec_itemsize, enc_itemsize)
    out_itemsize = jnp.dtype(out_dtype).itemsize

    # tm is the sublane dim of both the dec tile and the output tile: align to
    # the stricter of the two packing requirements.
    tm_align = max(_sublane_align(decoder_states.dtype), _sublane_align(out_dtype))

    # Per-generation VMEM budget (v5e/v6e: 128 MiB, v7x: 64 MiB physical).
    try:
        vmem_cap = int(pltpu.get_tpu_info().vmem_capacity_bytes)
    except Exception:  # non-TPU / older API: assume the smallest (v7x) VMEM
        vmem_cap = 64 * 1024 * 1024
    ws_budget = int(vmem_cap * 0.6)                       # pipelined working set
    vmem_limit = min(int(vmem_cap * 0.75), 100 * 1024 * 1024)

    # Large tile caps (biggest perf lever): fewer grid steps, less HBM re-fetch.
    tm = _pick_tile(T_dec, 512, tm_align)   # sublane dim
    tn = _pick_tile(T_enc, 1024, 128)       # lane dim of output (lane-dense vst)
    tk = _pick_tile(H, 2048, 128)           # lane dim of inputs / contraction

    def _working_set(tm_, tn_, tk_):
        # double-buffered inputs + double-buffered output + f32 accumulator
        return (2 * (tm_ * tk_ + tn_ * tk_) * in_itemsize
                + 2 * tm_ * tn_ * out_itemsize
                + tm_ * tn_ * 4)

    while _working_set(tm, tn, tk) > ws_budget:
        if tk > 128:
            tk = _halve_aligned(tk, 128)
        elif tn > 128:
            tn = _halve_aligned(tn, 128)
        elif tm > tm_align:
            tm = _halve_aligned(tm, tm_align)
        else:
            break

    # v7x has 2 TensorCores: keep >= 2 "parallel" grid tiles when possible.
    while B * _cdiv(T_dec, tm) * _cdiv(T_enc, tn) < 2:
        new_tn = _halve_aligned(tn, 128)
        new_tm = _halve_aligned(tm, tm_align)
        if new_tn < tn and _cdiv(T_enc, new_tn) >= 2:
            tn = new_tn
        elif new_tm < tm and _cdiv(T_dec, new_tm) >= 2:
            tm = new_tm
        else:
            break

    T_dec_p = _round_up(T_dec, tm)
    T_enc_p = _round_up(T_enc, tn)
    H_p = _round_up(H, tk)

    def _pad3(x, d1, d2):
        p1, p2 = d1 - x.shape[1], d2 - x.shape[2]
        if p1 or p2:
            x = jnp.pad(x, ((0, 0), (0, p1), (0, p2)))
        return x

    # Zero H-padding does not change dot products; padded rows/cols sliced off.
    dec_p = _pad3(decoder_states, T_dec_p, H_p)
    enc_p = _pad3(encoder_states, T_enc_p, H_p)

    M_tiles = T_dec_p // tm
    N_tiles = T_enc_p // tn
    K_tiles = H_p // tk

    # Cost estimate reflects actual DMA traffic (dec re-read N_tiles times,
    # enc re-read M_tiles times), not one pass over each array.
    cost = pl.CostEstimate(
        flops=int(2 * B * T_dec_p * T_enc_p * H_p),
        transcendentals=0,
        bytes_accessed=int(
            B * T_dec_p * H_p * dec_itemsize * N_tiles
            + B * T_enc_p * H_p * enc_itemsize * M_tiles
            + B * T_dec_p * T_enc_p * out_itemsize
        ),
    )

    compute_dtype = jnp.bfloat16 if use_bf16_compute else out_dtype

    if K_tiles == 1:
        # Common case: whole H fits in one tile -> no accumulator, no K axis,
        # every grid axis "parallel".
        kernel = functools.partial(_dot_kernel_single_k, compute_dtype=compute_dtype)
        grid = (B, M_tiles, N_tiles)
        in_specs = [
            pl.BlockSpec((pl.Squeezed(), tm, tk), lambda b, i, j: (b, i, 0)),
            pl.BlockSpec((pl.Squeezed(), tn, tk), lambda b, i, j: (b, j, 0)),
        ]
        out_specs = pl.BlockSpec((pl.Squeezed(), tm, tn), lambda b, i, j: (b, i, j))
        scratch_shapes = []
        dim_sem = ("parallel", "parallel", "parallel")
    else:
        kernel = functools.partial(_dot_kernel_multi_k, compute_dtype=compute_dtype)
        grid = (B, M_tiles, N_tiles, K_tiles)
        in_specs = [
            pl.BlockSpec((pl.Squeezed(), tm, tk), lambda b, i, j, k: (b, i, k)),
            pl.BlockSpec((pl.Squeezed(), tn, tk), lambda b, i, j, k: (b, j, k)),
        ]
        out_specs = pl.BlockSpec(
            (pl.Squeezed(), tm, tn), lambda b, i, j, k: (b, i, j)
        )
        scratch_shapes = [pltpu.VMEM((tm, tn), jnp.float32)]
        dim_sem = ("parallel", "parallel", "parallel", "arbitrary")

    out_p = pl.pallas_call(
        kernel,
        out_shape=jax.ShapeDtypeStruct((B, T_dec_p, T_enc_p), out_dtype),
        grid_spec=pltpu.PrefetchScalarGridSpec(
            num_scalar_prefetch=0,
            grid=grid,
            in_specs=in_specs,
            out_specs=out_specs,
            scratch_shapes=scratch_shapes,
        ),
        compiler_params=pltpu.CompilerParams(
            dimension_semantics=dim_sem,
            vmem_limit_bytes=vmem_limit,
        ),
        cost_estimate=cost,
    )(dec_p, enc_p)

    # Strip the tile padding back off.
    return out_p[:, :T_dec, :T_enc]


if __name__ == "__main__":
    # Small shapes consistent with the module's forward:
    # decoder_states: (B, T_dec, H), encoder_states: (B, T_enc, H)
    B, T_dec, T_enc, H = 2, 8, 16, 32

    key = jax.random.PRNGKey(0)
    k_dec, k_enc = jax.random.split(key)
    decoder_states = jax.random.normal(k_dec, (B, T_dec, H), dtype=jnp.float32)
    encoder_states = jax.random.normal(k_enc, (B, T_enc, H), dtype=jnp.float32)

    # prefer_xla_for_small=False so the Pallas kernel itself is exercised even
    # at this demo-sized problem (the fallback would win in production here).
    attn = dot_attention(decoder_states, encoder_states, prefer_xla_for_small=False)
    attn = jax.block_until_ready(attn)

    # Reference check against plain JAX bmm semantics.
    ref = jnp.einsum("btd,bkd->btk", decoder_states, encoder_states)
    assert attn.shape == (B, T_dec, T_enc)
    assert jnp.allclose(attn, ref, atol=1e-5, rtol=1e-5)

    print("KERNEL_OK")
</pallas_src>

<mosaic_0001>
module attributes {stable_mosaic.version = 11 : i64} {
  func.func @_dot_kernel_single_k(%arg0: i32, %arg1: i32, %arg2: i32, %arg3: memref<1x8x128xf32, #tpu.memory_space<vmem>>, %arg4: memref<1x128x128xf32, #tpu.memory_space<vmem>>, %arg5: memref<1x8x128xf32, #tpu.memory_space<vmem>>) attributes {dimension_semantics = [#tpu.dimension_semantics<parallel>, #tpu.dimension_semantics<parallel>, #tpu.dimension_semantics<parallel>], iteration_bounds = array<i64: 2, 1, 1>, scalar_prefetch = 0 : i64, scratch_operands = 0 : i64, tpu.core_type = #tpu.core_type<tc>, window_params = [{transform_indices = @transform_0, window_bounds = array<i64: 1, 8, 128>}, {transform_indices = @transform_1, window_bounds = array<i64: 1, 128, 128>}, {transform_indices = @transform_2, window_bounds = array<i64: 1, 8, 128>}]} {
    %c0 = arith.constant 0 : index
    %c0_0 = arith.constant 0 : index
    %c0_1 = arith.constant 0 : index
    %0 = vector.load %arg3[%c0, %c0_0, %c0_1] : memref<1x8x128xf32, #tpu.memory_space<vmem>>, vector<1x8x128xf32>
    %1 = vector.shape_cast %0 : vector<1x8x128xf32> to vector<8x128xf32>
    %c0_2 = arith.constant 0 : index
    %c0_3 = arith.constant 0 : index
    %c0_4 = arith.constant 0 : index
    %2 = vector.load %arg4[%c0_2, %c0_3, %c0_4] : memref<1x128x128xf32, #tpu.memory_space<vmem>>, vector<1x128x128xf32>
    %3 = vector.shape_cast %2 : vector<1x128x128xf32> to vector<128x128xf32>
    %cst = arith.constant dense<0.000000e+00> : vector<8x128xf32>
    %4 = tpu.matmul %1, %3, %cst {dimension_numbers = #tpu.dot_dimension_numbers<[1], [1], [0], [0], [0, 0, 1, 0], [], []>} : vector<8x128xf32>, vector<128x128xf32>, vector<8x128xf32> -> vector<8x128xf32>
    %c0_5 = arith.constant 0 : index
    %c0_6 = arith.constant 0 : index
    %c0_7 = arith.constant 0 : index
    %5 = vector.load %arg5[%c0_5, %c0_6, %c0_7] : memref<1x8x128xf32, #tpu.memory_space<vmem>>, vector<1x8x128xf32>
    %6 = vector.shape_cast %5 : vector<1x8x128xf32> to vector<8x128xf32>
    %7 = vector.shape_cast %4 : vector<8x128xf32> to vector<1x8x128xf32>
    tpu.vector_store %arg5[%c0_5, %c0_6, %c0_7], %7 {strides = array<i32>} : memref<1x8x128xf32, #tpu.memory_space<vmem>>, vector<1x8x128xf32>,
    return
  }
  func.func @transform_0(%arg0: i32, %arg1: i32, %arg2: i32) -> (i32, i32, i32) {
    %c0_i32 = arith.constant 0 : i32
    %c0_i32_0 = arith.constant 0 : i32
    return %arg0, %arg1, %c0_i32 : i32, i32, i32
  }
  func.func @transform_1(%arg0: i32, %arg1: i32, %arg2: i32) -> (i32, i32, i32) {
    %c0_i32 = arith.constant 0 : i32
    %c0_i32_0 = arith.constant 0 : i32
    return %arg0, %arg2, %c0_i32 : i32, i32, i32
  }
  func.func @transform_2(%arg0: i32, %arg1: i32, %arg2: i32) -> (i32, i32, i32) {
    %c0_i32 = arith.constant 0 : i32
    return %arg0, %arg1, %arg2 : i32, i32, i32
  }
}

</mosaic_0001>

<bundles_post_ra>
// kernel: tpu_custom_call.1
= control target key start
LH: loop header
LB: loop body
LE: loop exit
PB: predicated region body
PF: predicated region fallthrough
CT: control target
= control target key end

     0   :  { %7 = vsyncpa [#allocation3], 0  ;;  %s950_s0 = inlined_call_operand.hbm [shape: f32[2,8,128], index: 0, kind: input, shape index: {}]   ;;  %s951_s1 = inlined_call_operand.hbm [shape: f32[2,128,128], index: 1, kind: input, shape index: {}]   ;;  %s952_s2 = inlined_call_operand.hbm [shape: f32[2,8,128], index: 2, kind: output, shape index: {}]  }
   0x1   :  { %9 = vsyncpa [#allocation3 + $0x1], 0 }
   0x2   :  { %10 = vsyncpa [#allocation6], 0 }
   0x3   :  { %12 = vsyncpa [#allocation6 + $0x1], 0 }
   0x4   :  { %13 = vsyncpa [#allocation4], 0 }
   0x5   :  { %15 = vsyncpa [#allocation4 + $0x1], 0  ;;  %s749_s9 = smov 0   ;;  %s751_s10 = smov 0  }
   0x6   :  { %s753_s11 = smov 0   ;;  %s755_s12 = smov 0  }
   0x7   :  { %s757_s13 = smov 0   ;;  %s759_s14 = smov 0  }
   0x8 LB: > { %s444_s15 = sadd.s32 4294967295, %s725_s14   ;;  %s445_s16 = sadd.s32 4294967294, %s725_s14   ;;  %s725_s14 = sphi %s759_s14, %s21_s14   ;;  %s721_s13 = sphi %s757_s13, %s964_s13   ;;  %s717_s12 = sphi %s755_s12, %s963_s12   ;;  %s713_s11 = sphi %s753_s11, %s962_s11   ;;  %s709_s10 = sphi %s751_s10, %s961_s10   ;;  %s705_s9 = sphi %s749_s9, %s960_s9  }
   0x9   : > { %s40_s17 = sadd.s32 1, %s721_s13  ;;  %s49_s18 = sadd.s32 1, %s713_s11 }
   0xa   : > { %p42_p0 = scmp.ge.s32.totalorder %s40_s17, 2  ;;  %p56_p1 = scmp.ne.s32.totalorder %s713_s11, %s709_s10 }
   0xb   : > { %p57_p2 = scmp.eq.s32.totalorder %s725_s14, 0  ;;  %p62_p3 = scmp.ne.s32.totalorder %s709_s10, %s705_s9 }
   0xc   : > { %s966_s17 = smov (%p42_p0, %s40_s17), 0  ;;  %p63_p5 = scmp.eq.s32.totalorder %s444_s15, 0 }
   0xd   : > { %p790_p4 = por %p57_p2, %p56_p1  ;;  %s44_s20 = ssub.s32 %s721_s13, %s966_s17 }
   0xe   : > { %p118_p6 = scmp.eq.s32.totalorder %s444_s15, 1  ;;  %p47_p7 = scmp.eq.s32.totalorder %s44_s20, 0 }
   0xf   : > { %p796_p8 = por %p63_p5, %p62_p3  ;;  %p124_p10 = scmp.eq.s32.totalorder %s445_s16, 1 }
  0x10   : > { %p800_p9 = por %p118_p6, %p56_p1  ;;  %p531_p13 = scmp.lt.s32.totalorder %s725_s14, 2 }
  0x11   : > { %s805_s23 = scalar_select %p47_p7, %s713_s11, %s49_s18  }
  0x12   : > { %p807_p11 = por %p124_p10, %p62_p3  ;;  %s814_s25 = sand.u32 1, %s713_s11  }
  0x13   : > { %s448_s26 = sshll.u32 %s814_s25, 3  ;;  %s449_s27 = sshll.u32 %s721_s13, 7 }
  0x14   : > { %s154_s30 = scalar_lea.hbm %s950_s0, %s449_s27  ;;  %s148_s3 = scalar_lea.vmem [#allocation2], %s448_s26 }
  0x15   : > { %s156_s4 = sshll.u32 %s148_s3, 4  ;;  %p823_p0 = pnand %p531_p13, %p790_p4  ;;  %s157_s4 = int_to_ptr.vmem [resolvable:$true] %s156_s4 }
  0x16   : > { %p453_p1 = scmp.ge.s32.totalorder %s725_s14, 1  ;;  %p184_p2 = scmp.lt.s32.totalorder %s725_s14, 3 }
  0x17   : > { %s145_s6 = scalar_lea.sflag [#allocation3], %s814_s25  ;;  %p587_p3 = pneg %p823_p0 }
  0x18   : > { %s598_s7 = scalar_lea.vmem %s157_s4, 128  ;;  %s727_s8 = smov [#allocation2]  }
  0x19   : > { %p599_p5 = scmp.ne.s32.totalorder %s157_s4, %s598_s7  ;;  %s603_s15 = sshll.u32 %s727_s8, 4  ;;  %s604_s15 = int_to_ptr.vmem [resolvable:$false] %s603_s15 }
  0x1a   : > { %s605_s16 = scalar_lea.vmem %s604_s15, 256  ;;  %p606_p4 = scmp.lt.s32.totalorder %s157_s4, %s604_s15 }
  0x1b   : > { %p601_p6 = pnand %p599_p5, %p587_p3  ;;  %p607_p10 = scmp.lt.s32.totalorder %s605_s16, %s598_s7 }
  0x1d   : > { %p602_p7 = pneg %p601_p6  ;;  %p608_p13 = por %p607_p10, %p606_p4 }
  0x1f   : > { %p609_p12 = pnand %p608_p13, %p602_p7 }
  0x21   : > { %612 = shalt.err (!%p609_p12)
}
  0x22   : > { %523 = dma.hbm_to_vmem [thread:$0]  (!%p823_p0), %s154_s30, 128, %s157_s4, %s145_s6  }
  0x23   : > { %p841_p5 = pnand %p453_p1, %p184_p2  ;;  %s450_s19 = sshll.u32 %s814_s25, 7 }
  0x24   : > { %s461_s20 = sshll.u32 %s721_s13, 11  ;;  %s167_s29 = scalar_lea.vmem [#allocation5], %s450_s19 }
  0x25   : > { %s175_s28 = scalar_lea.hbm %s951_s1, %s461_s20  ;;  %s176_s3 = sshll.u32 %s167_s29, 4  ;;  %s177_s3 = int_to_ptr.vmem [resolvable:$true] %s176_s3 }
  0x26   : > { %s164_s7 = scalar_lea.sflag [#allocation6], %s814_s25  ;;  %s626_s8 = scalar_lea.vmem %s177_s3, 2048 }
  0x27   : > { %p627_p12 = scmp.ne.s32.totalorder %s177_s3, %s626_s8  ;;  %s728_s30 = smov [#allocation5]  }
  0x28   : > { %s631_s4 = sshll.u32 %s728_s30, 4  ;;  %s632_s4 = int_to_ptr.vmem [resolvable:$false] %s631_s4 }
  0x29   : > { %p629_p6 = pnand %p627_p12, %p587_p3  ;;  %s633_s6 = scalar_lea.vmem %s632_s4, 4096 }
  0x2a   : > { %p634_p1 = scmp.lt.s32.totalorder %s177_s3, %s632_s4  ;;  %p635_p2 = scmp.lt.s32.totalorder %s633_s6, %s626_s8 }
  0x2b   : > { %p630_p7 = pneg %p629_p6 }
  0x2c   : > { %p636_p4 = por %p635_p2, %p634_p1 }
  0x2e   : > { %p637_p10 = pnand %p636_p4, %p630_p7 }
  0x30   : > { %640 = shalt.err (!%p637_p10)
}
  0x31   : > { %s729_s15 = smov 128   ;;  %s730_s16 = smov 8  }
  0x32   : > { %526 = dma.hbm_to_vmem [thread:$0]  (!%p823_p0), %s175_s28, 2048, %s177_s3, %s164_s7, %s729_s15, %s729_s15, %s730_s16  }
  0x33   : > { %188 = sbr.rel (%p841_p5) target bundleno = 332 (0x14c), region = 28  ;;  %s859_s25 = sand.u32 (!%p841_p5), 1, %s709_s10  }
  0x34   : > { %s454_s19 = sshll.u32 (!%p841_p5), %s859_s25, 3  ;;  %s191_s20 = scalar_lea.sflag (!%p841_p5), [#allocation3], %s859_s25 }
  0x35   : > { %s865_s26 = scalar_lea.vmem (!%p841_p5), [#allocation2], %s454_s19 }
  0x38   : > { %692 = dma.done.wait (%p796_p8), %s191_s20, 128  }
  0x39   : > { %694 = vsyncadd (%p796_p8), %s191_s20, 4294967168  ;;  %s455_s5 = sshll.u32 %s859_s25, 7  ;;  %s200_s18 = scalar_lea.sflag [#allocation6], %s859_s25 }
  0x3a   : > { %s873_s27 = scalar_lea.vmem [#allocation5], %s455_s5 }
  0x3b   : > { %696 = dma.done.wait (%p796_p8), %s200_s18, 2048  }
  0x3c   : > { %698 = vsyncadd (%p796_p8), %s200_s18, 4294965248  ;;  %v731_v0 = vmov 0.0   ;;  %vm732_vm0 = vmmov 0   ;;  %v246_v1 = vld [vmem:[%s873_s27 + $0x78] sm:$0xff]  ;;  %v245_v2 = vld [vmem:[%s873_s27 + $0x70] sm:$0xff]  ;;  %s228_s21 = scalar_lea.vmem [#allocation7], %s454_s19 }
  0x3d   : > { %479 = vmatprep.subr.mxu0 %v731_v0  ;;  %511 = vmatprep.mubr.msk.f32.mxu0 %vm732_vm0, %v731_v0  ;;  %v244_v3 = vld [vmem:[%s873_s27 + $0x68] sm:$0xff]  ;;  %v243_v4 = vld [vmem:[%s873_s27 + $0x60] sm:$0xff]  ;;  %v242_v5 = vld [vmem:[%s873_s27 + $0x58] sm:$0xff]  ;;  %s334_s28 = sshll.u32 %s228_s21, 4  ;;  %s458_s29 = sshll.u32 %s717_s12, 7  ;;  %s899_s28 = int_to_ptr.vmem [resolvable:$true] %s334_s28 }
  0x3e   : > { %480 = vmatpush3.xpose.msra.mxu0 %v246_v1  ;;  %v241_v6 = vld [vmem:[%s873_s27 + $0x50] sm:$0xff]  ;;  %v240_v7 = vld [vmem:[%s873_s27 + $0x48] sm:$0xff]  ;;  %v239_v8 = vld [vmem:[%s873_s27 + $0x40] sm:$0xff]  ;;  %s904_s8 = scalar_lea.hbm %s952_s2, %s458_s29  ;;  %s319_s30 = scalar_lea.sflag [#allocation4], %s859_s25 }
  0x3f   : > { %481 = vmatprep.subr.mxu0 %v731_v0  ;;  %v238_v9 = vld [vmem:[%s873_s27 + $0x38] sm:$0xff]  ;;  %v237_v10 = vld [vmem:[%s873_s27 + $0x30] sm:$0xff]  ;;  %v236_v11 = vld [vmem:[%s873_s27 + $0x28] sm:$0xff]  ;;  %s641_s4 = scalar_lea.vmem %s899_s28, 128  ;;  %s733_s12 = smov [#allocation7]  }
  0x40   : > { %v235_v12 = vld [vmem:[%s873_s27 + $0x20] sm:$0xff]  ;;  %v234_v13 = vld [vmem:[%s873_s27 + $0x18] sm:$0xff]  ;;  %v233_v14 = vld [vmem:[%s873_s27 + $0x10] sm:$0xff]  ;;  %p642_p8 = scmp.ne.s32.totalorder %s899_s28, %s641_s4  ;;  %s645_s6 = sshll.u32 %s733_s12, 4  ;;  %s646_s6 = int_to_ptr.vmem [resolvable:$false] %s645_s6 }
  0x41   : > { %v232_v15 = vld [vmem:[%s873_s27 + $0x8] sm:$0xff]  ;;  %v231_v16 = vld [vmem:[%s873_s27] sm:$0xff]  ;;  %v230_v17 = vld [vmem:[%s865_s26] sm:$0xff]  ;;  %s647_s15 = scalar_lea.vmem %s646_s6, 256  ;;  %p648_p13 = scmp.lt.s32.totalorder %s899_s28, %s646_s6 }
  0x42   : > { %482 = vmatpush3.xpose.msra.mxu0 %v245_v2  ;;  %p643_p0 = pnand %p642_p8, %p800_p9  ;;  %p649_p5 = scmp.lt.s32.totalorder %s647_s15, %s641_s4 }
  0x43   : > { %483 = vmatprep.subr.mxu0 %v731_v0 }
  0x44   : > { %p644_p3 = pneg %p643_p0  ;;  %p650_p12 = por %p649_p5, %p648_p13 }
  0x46   : > { %484 = vmatpush3.xpose.msra.mxu0 %v244_v3  ;;  %p651_p6 = pnand %p650_p12, %p644_p3 }
  0x47   : > { %485 = vmatprep.subr.mxu0 %v731_v0 }
  0x4a   : > { %486 = vmatpush3.xpose.msra.mxu0 %v243_v4 }
  0x4b   : > { %487 = vmatprep.subr.mxu0 %v731_v0 }
  0x4e   : > { %488 = vmatpush3.xpose.msra.mxu0 %v242_v5 }
  0x4f   : > { %489 = vmatprep.subr.mxu0 %v731_v0 }
  0x52   : > { %490 = vmatpush3.xpose.msra.mxu0 %v241_v6 }
  0x53   : > { %491 = vmatprep.subr.mxu0 %v731_v0 }
  0x56   : > { %492 = vmatpush3.xpose.msra.mxu0 %v240_v7 }
  0x57   : > { %493 = vmatprep.subr.mxu0 %v731_v0 }
  0x5a   : > { %494 = vmatpush3.xpose.msra.mxu0 %v239_v8 }
  0x5b   : > { %495 = vmatprep.subr.mxu0 %v731_v0 }
  0x5e   : > { %496 = vmatpush3.xpose.msra.mxu0 %v238_v9 }
  0x5f   : > { %497 = vmatprep.subr.mxu0 %v731_v0 }
  0x62   : > { %498 = vmatpush3.xpose.msra.mxu0 %v237_v10 }
  0x63   : > { %499 = vmatprep.subr.mxu0 %v731_v0 }
  0x66   : > { %500 = vmatpush3.xpose.msra.mxu0 %v236_v11 }
  0x67   : > { %501 = vmatprep.subr.mxu0 %v731_v0 }
  0x6a   : > { %502 = vmatpush3.xpose.msra.mxu0 %v235_v12 }
  0x6b   : > { %503 = vmatprep.subr.mxu0 %v731_v0 }
  0x6e   : > { %504 = vmatpush3.xpose.msra.mxu0 %v234_v13 }
  0x6f   : > { %505 = vmatprep.subr.mxu0 %v731_v0 }
  0x72   : > { %506 = vmatpush3.xpose.msra.mxu0 %v233_v14 }
  0x73   : > { %507 = vmatprep.subr.mxu0 %v731_v0 }
  0x76   : > { %508 = vmatpush3.xpose.msra.mxu0 %v232_v15 }
  0x77   : > { %509 = vmatprep.subr.mxu0 %v731_v0 }
  0x7a   : > { %510 = vmatpush3.xpose.msra.mxu0 %v231_v16 }
  0x7d   : > { %512 = vmatmul.mubr.f32.vlgmr.msra.gmra.mxu0 %v230_v17 }
 0x13d   : > { %v313_v18 = vpop.f32.mrf.mxu0 }
 0x13e   : > { %317 = vst [vmem:[%s228_s21] sm:$0xff] %v313_v18 }
 0x13f   : > { %v513_v19 = vpop.f32.mrf.mxu0 }
 0x140   : > { %654 = shalt.err (!%p651_p6)
}
 0x141   : > { %s655_s16 = scalar_lea.hbm %s904_s8, 128  ;;  %s659_s20 = scalar_lea.hbm %s952_s2, 256 }
 0x142   : > { %p656_p7 = scmp.ne.s32.totalorder %s904_s8, %s655_s16  ;;  %p660_p4 = scmp.lt.s32.totalorder %s904_s8, %s952_s2 }
 0x143   : > { %p661_p10 = scmp.lt.s32.totalorder %s659_s20, %s655_s16 }
 0x144   : > { %p657_p1 = pnand %p656_p7, %p800_p9 }
 0x145   : > { %p662_p8 = por %p661_p10, %p660_p4 }
 0x146   : > { %p658_p2 = pneg %p657_p1 }
 0x148   : > { %p663_p0 = pnand %p662_p8, %p658_p2 }
 0x14a   : > { %666 = shalt.err (!%p663_p0)
}
 0x14b   : > { %518 = dma.vmem_to_hbm [thread:$0]  (%p800_p9), %s899_s28, 128, %s904_s8, %s319_s30  }
 0x14c PF: > { %s346_s18 = sand.u32 1, %s705_s9   ;;  %p959_p3 = scmp.ge.s32.totalorder %s725_s14, 2 }
 0x14d   : > { %s347_s27 = scalar_lea.sflag [#allocation4], %s346_s18 }
 0x14e   : > { %p528_p13 = pnand %p959_p3, %p807_p11 }
 0x150   : > { %p529_p5 = pneg %p528_p13 }
 0x152   : > { %700 = dma.done.wait (%p529_p5), %s347_s27, 128  }
 0x153   : > { %702 = vsyncadd (%p529_p5), %s347_s27, 4294967168  ;;  %s21_s14 = sadd.s32 1, %s725_s14   ;;  %s960_s9 = smov %s709_s10 }
 0x154   : > { %p18_p12 = scmp.ge.s32.totalorder %s21_s14, 4   ;;  %s961_s10 = smov %s713_s11 }
 0x155   : > { %s962_s11 = smov %s805_s23  ;;  %s963_s12 = smov %s721_s13 }
 0x156   : > { %s964_s13 = smov %s966_s17  ;;  %20 = sbr.rel (!%p18_p12) target bundleno = 8 (0x8), region = 86 }
 0x15b   :  { %352 = vsyncpa [#allocation3], 1 }
 0x15c   :  { %354 = vsyncpa [#allocation3 + $0x1], 1 }
 0x15d   :  { %355 = vsyncpa [#allocation6], 1 }
 0x15e   :  { %357 = vsyncpa [#allocation6 + $0x1], 1 }
 0x15f   :  { %358 = vsyncpa [#allocation4], 1 }
 0x160   :  { %360 = vsyncpa [#allocation4 + $0x1], 1 }

</bundles_post_ra>
